<compile_context>
chip_gen: v5e
topology: v5e:2x2
jax: 0.10.0
libtpu: 0.0.40
codegen_flags: <defaults>
</compile_context>

<pallas_src>
import jax
import jax.numpy as jnp
from jax.experimental import pallas as pl
from jax.experimental.pallas import tpu as pltpu


def linear_bias_kernel(x_ref, w_ref, b_ref, o_ref):
    # x_ref: (tm, K)   w_ref: (K, N)   b_ref: (1, N)   o_ref: (tm, N)
    acc = jnp.dot(x_ref[...], w_ref[...], preferred_element_type=jnp.float32)
    o_ref[...] = (acc + b_ref[...]).astype(o_ref.dtype)


def linear_pallas(x2d, weight, bias, *, tm=192):
    """y = x2d @ weight^T + bias.

    x2d:    (M, K)
    weight: (N, K)  -- PyTorch Linear layout (out_features, in_features)
    bias:   (N,)
    """
    M, K = x2d.shape
    N, K2 = weight.shape
    assert K == K2
    assert M % tm == 0 and tm % 8 == 0 and N % 128 == 0

    # Present the weight as (K, N): plain row-major contraction inside the
    # kernel, no in-kernel transpose.  For parameters this relayout is a
    # one-time hoisted op under jit.
    w_kn = weight.T
    bias2d = bias.reshape(1, N)

    itemsize = jnp.dtype(x2d.dtype).itemsize
    cost = pl.CostEstimate(
        flops=2 * M * K * N,
        transcendentals=0,
        bytes_accessed=(M * K + K * N + N + M * N) * itemsize,
    )

    grid = (M // tm,)
    return pl.pallas_call(
        linear_bias_kernel,
        out_shape=jax.ShapeDtypeStruct((M, N), x2d.dtype),
        grid_spec=pltpu.PrefetchScalarGridSpec(
            num_scalar_prefetch=0,
            grid=grid,
            in_specs=[
                pl.BlockSpec((tm, K), lambda i: (i, 0)),   # x: blocked over M
                pl.BlockSpec((K, N), lambda i: (0, 0)),    # W: VMEM-resident
                pl.BlockSpec((1, N), lambda i: (0, 0)),    # bias: VMEM-resident
            ],
            out_specs=pl.BlockSpec((tm, N), lambda i: (i, 0)),
        ),
        compiler_params=pltpu.CompilerParams(
            dimension_semantics=("parallel",),
        ),
        cost_estimate=cost,
    )(x2d, w_kn, bias2d)


def forward(x183, weight, bias, x186=(1, 384, 256)):
    # x187 = x183.view(x186): (1, 384, 4, 64) -> (1, 384, 256)
    x187 = x183.reshape(x186)
    M = x186[0] * x186[1]
    K = x186[2]
    x2d = x187.reshape(M, K)
    # Linear(256, 256): y = x @ W^T + b (bias add fused in the kernel).
    y2d = linear_pallas(x2d, weight, bias)
    x188 = y2d.reshape(x186)
    # Dropout(p=0.1) is the identity at inference.
    x189 = x188
    return x189


if __name__ == "__main__":
    key = jax.random.PRNGKey(0)
    kx, kw, kb = jax.random.split(key, 3)

    # Input shape from the module definition.
    x183 = jax.random.normal(kx, (1, 384, 4, 64), dtype=jnp.float32)

    # Deterministic Linear(256, 256) parameters (PyTorch layout: (out, in)).
    in_features, out_features = 256, 256
    bound = 1.0 / (in_features ** 0.5)
    weight = jax.random.uniform(
        kw, (out_features, in_features), minval=-bound, maxval=bound,
        dtype=jnp.float32)
    bias = jax.random.uniform(
        kb, (out_features,), minval=-bound, maxval=bound, dtype=jnp.float32)

    out = forward(x183, weight, bias)
    out = jax.block_until_ready(out)

    # Reference check in plain JAX.
    ref = x183.reshape(1, 384, 256) @ weight.T + bias
    assert out.shape == (1, 384, 256)
    assert jnp.allclose(out, ref, atol=1e-4, rtol=1e-4)

    print("KERNEL_OK")
</pallas_src>

<mosaic_0001>
module attributes {stable_mosaic.version = 11 : i64} {
  func.func @linear_bias_kernel(%arg0: i32, %arg1: memref<192x256xf32, #tpu.memory_space<vmem>>, %arg2: memref<256x256xf32, #tpu.memory_space<vmem>>, %arg3: memref<1x256xf32, #tpu.memory_space<vmem>>, %arg4: memref<192x256xf32, #tpu.memory_space<vmem>>) attributes {dimension_semantics = [#tpu.dimension_semantics<parallel>], iteration_bounds = array<i64: 2>, scalar_prefetch = 0 : i64, scratch_operands = 0 : i64, tpu.core_type = #tpu.core_type<tc>, window_params = [{transform_indices = @transform_0, window_bounds = array<i64: 192, 256>}, {pipeline_mode = #tpu.pipeline_mode<synchronous>, transform_indices = @transform_1, window_bounds = array<i64: 256, 256>}, {pipeline_mode = #tpu.pipeline_mode<synchronous>, transform_indices = @transform_2, window_bounds = array<i64: 1, 256>}, {transform_indices = @transform_3, window_bounds = array<i64: 192, 256>}]} {
    %c0 = arith.constant 0 : index
    %c0_0 = arith.constant 0 : index
    %0 = vector.load %arg1[%c0, %c0_0] : memref<192x256xf32, #tpu.memory_space<vmem>>, vector<192x256xf32>
    %c0_1 = arith.constant 0 : index
    %c0_2 = arith.constant 0 : index
    %1 = vector.load %arg2[%c0_1, %c0_2] : memref<256x256xf32, #tpu.memory_space<vmem>>, vector<256x256xf32>
    %cst = arith.constant dense<0.000000e+00> : vector<192x256xf32>
    %2 = tpu.matmul %0, %1, %cst {dimension_numbers = #tpu.dot_dimension_numbers<[1], [0], [0], [1], [0, 0, 1, 1], [], []>} : vector<192x256xf32>, vector<256x256xf32>, vector<192x256xf32> -> vector<192x256xf32>
    %c0_3 = arith.constant 0 : index
    %c0_4 = arith.constant 0 : index
    %3 = vector.load %arg3[%c0_3, %c0_4] : memref<1x256xf32, #tpu.memory_space<vmem>>, vector<1x256xf32>
    %4 = vector.broadcast %3 : vector<1x256xf32> to vector<192x256xf32>
    %5 = arith.addf %2, %4 : vector<192x256xf32>
    %c0_5 = arith.constant 0 : index
    %c0_6 = arith.constant 0 : index
    %6 = vector.load %arg4[%c0_5, %c0_6] : memref<192x256xf32, #tpu.memory_space<vmem>>, vector<192x256xf32>
    tpu.vector_store %arg4[%c0_5, %c0_6], %5 {strides = array<i32>} : memref<192x256xf32, #tpu.memory_space<vmem>>, vector<192x256xf32>,
    return
  }
  func.func @transform_0(%arg0: i32) -> (i32, i32) {
    %c0_i32 = arith.constant 0 : i32
    %c0_i32_0 = arith.constant 0 : i32
    return %arg0, %c0_i32 : i32, i32
  }
  func.func @transform_1(%arg0: i32) -> (i32, i32) {
    %c0_i32 = arith.constant 0 : i32
    %c0_i32_0 = arith.constant 0 : i32
    %c0_i32_1 = arith.constant 0 : i32
    return %c0_i32, %c0_i32_0 : i32, i32
  }
  func.func @transform_2(%arg0: i32) -> (i32, i32) {
    %c0_i32 = arith.constant 0 : i32
    %c0_i32_0 = arith.constant 0 : i32
    %c0_i32_1 = arith.constant 0 : i32
    return %c0_i32, %c0_i32_0 : i32, i32
  }
  func.func @transform_3(%arg0: i32) -> (i32, i32) {
    %c0_i32 = arith.constant 0 : i32
    %c0_i32_0 = arith.constant 0 : i32
    return %arg0, %c0_i32 : i32, i32
  }
}

</mosaic_0001>

<bundles_post_ra>
// kernel: tpu_custom_call.1
= control target key start
LH: loop header
LB: loop body
LE: loop exit
PB: predicated region body
PF: predicated region fallthrough
CT: control target
= control target key end

     0   :  { %8 = vsyncpa [#allocation3], 0  ;;  %s1441_s0 = inlined_call_operand.hbm [shape: f32[384,256], index: 0, kind: input, shape index: {}]   ;;  %s1442_s1 = inlined_call_operand.hbm [shape: f32[256,256], index: 1, kind: input, shape index: {}]   ;;  %s1443_s2 = inlined_call_operand.hbm [shape: f32[1,256], index: 2, kind: input, shape index: {}]   ;;  %s1444_s3 = inlined_call_operand.hbm [shape: f32[384,256], index: 3, kind: output, shape index: {}]  }
   0x1   :  { %10 = vsyncpa [#allocation3 + $0x1], 0 }
   0x2   :  { %11 = vsyncpa [#allocation6], 0 }
   0x3   :  { %12 = vsyncpa [#allocation4], 0 }
   0x4   :  { %14 = vsyncpa [#allocation4 + $0x1], 0  ;;  %s1137_s12 = smov 0   ;;  %s1139_s13 = smov 0  }
   0x5   :  { %s1141_s14 = smov 0   ;;  %s1143_s15 = smov 0  }
   0x6 LB: > { %s1158_s16 = sadd.s32 4294967295, %s1109_s15   ;;  %s856_s17 = sadd.s32 4294967294, %s1109_s15   ;;  %s1109_s15 = sphi %s1143_s15, %s1456_s15   ;;  %s1105_s14 = sphi %s1141_s14, %s1455_s14   ;;  %s1101_s13 = sphi %s1139_s13, %s1454_s13   ;;  %s1097_s12 = sphi %s1137_s12, %s1453_s12  }
   0x7   : > { %p40_p0 = scmp.ne.s32.totalorder %s1101_s13, %s1097_s12  ;;  %p41_p1 = scmp.eq.s32.totalorder %s1158_s16, 0 }
   0x8   : > { %p106_p2 = scmp.eq.s32.totalorder %s1158_s16, 1  ;;  %p112_p3 = scmp.eq.s32.totalorder %s856_s17, 1 }
   0x9   : > { %p1167_p4 = por %p41_p1, %p40_p0  ;;  %p857_p5 = scmp.ge.s32.totalorder %s1109_s15, 1 }
   0xa   : > { %p1172_p6 = por %p112_p3, %p40_p0  ;;  %p119_p7 = scmp.lt.s32.totalorder %s1109_s15, 3 }
   0xb   : > { %s130_s22 = sshll.u32 %s1442_s1, 4  ;;  %s1111_s24 = smov [#allocation5]   ;;  %s131_s22 = int_to_ptr.hbm [resolvable:$true] %s130_s22 }
   0xc   : > { %p1180_p8 = pnand %p857_p5, %p119_p7  ;;  %s132_s25 = sshll.u32 %s1111_s24, 4  ;;  %s133_s25 = int_to_ptr.vmem [resolvable:$true] %s132_s25 }
   0xd   : > { %s145_s28 = sshll.u32 %s1443_s2, 4  ;;  %s1445_s29 = smov 256   ;;  %s146_s28 = int_to_ptr.hbm [resolvable:$true] %s145_s28 }
   0xe   : > { %p890_p9 = pneg %p1180_p8  ;;  %s1113_s30 = smov 16  }
   0xf   : > { %s1114_s4 = smov [#allocation7]   ;;  %s1196_s6 = sadd.s32 1, %s1109_s15  }
  0x10   : > { %p891_p10 = pnand %p890_p9, %p41_p1  ;;  %s147_s5 = sshll.u32 %s1114_s4, 4  ;;  %s148_s5 = int_to_ptr.vmem [resolvable:$true] %s147_s5 }
  0x11   : > { %s27_s7 = sadd.s32 1, %s1105_s14  ;;  %s24_s8 = ssub.s32 %s1109_s15, %s1196_s6 }
  0x12   : > { %893 = dma.hbm_to_vmem [thread:$0]  (!%p891_p10), %s131_s22, 8192, %s133_s25, [#allocation6], %s1445_s29, %s1445_s29, %s1113_s30  }
  0x13   : > { %896 = dma.hbm_to_vmem [thread:$0]  (!%p891_p10), %s146_s28, 32, %s148_s5, [#allocation6]  }
  0x14   : > { %p34_p12 = scmp.ne.s32.totalorder %s1105_s14, %s1101_s13  ;;  %p25_p13 = scmp.eq.s32.totalorder %s24_s8, 0 }
  0x15   : > { %p35_p0 = scmp.eq.s32.totalorder %s1109_s15, 0  ;;  %p907_p5 = scmp.lt.s32.totalorder %s1109_s15, 2 }
  0x16   : > { %p1206_p3 = por %p106_p2, %p34_p12  ;;  %s158_s11 = sand.u32 1, %s1105_s14  }
  0x17   : > { %s1212_s10 = scalar_select %p25_p13, %s1105_s14, %s27_s7  }
  0x18   : > { %p36_p7 = por %p35_p0, %p34_p12  ;;  %s876_s17 = smul.u32 384, %s158_s11 }
  0x19   : > { %s874_s20 = smul.u32 384, %s1109_s15  ;;  %s159_s4 = scalar_lea.sflag [#allocation3], %s158_s11 }
  0x1a   : > { %p1216_p9 = pnand %p907_p5, %p36_p7  ;;  %s162_s26 = scalar_lea.vmem [#allocation2], %s876_s17 }
  0x1b   : > { %s168_s25 = scalar_lea.hbm %s1441_s0, %s874_s20  ;;  %s171_s27 = sshll.u32 %s162_s26, 4  ;;  %s172_s27 = int_to_ptr.vmem [resolvable:$true] %s171_s27 }
  0x1c   : > { %s169_s28 = sshll.u32 %s168_s25, 4  ;;  %p1013_p10 = pneg %p1216_p9  ;;  %s170_s28 = int_to_ptr.hbm [resolvable:$true] %s169_s28 }
  0x1d   : > { %s1009_s5 = sshra.s32 %s170_s28, 4  ;;  %s1016_s22 = scalar_lea.hbm %s1441_s0, 768  ;;  %s1010_s5 = int_to_ptr.hbm [resolvable:$true] %s1009_s5 }
  0x1e   : > { %s1011_s7 = scalar_lea.hbm %s1010_s5, 384  ;;  %p1017_p0 = scmp.lt.s32.totalorder %s1010_s5, %s1441_s0 }
  0x1f   : > { %p1012_p2 = scmp.ne.s32.totalorder %s1010_s5, %s1011_s7  ;;  %p1018_p5 = scmp.lt.s32.totalorder %s1016_s22, %s1011_s7 }
  0x21   : > { %p1014_p12 = pnand %p1013_p10, %p1012_p2  ;;  %p1019_p7 = por %p1018_p5, %p1017_p0 }
  0x23   : > { %p1015_p13 = pneg %p1014_p12 }
  0x25   : > { %p1020_p11 = pnand %p1019_p7, %p1015_p13 }
  0x27   : > { %1023 = shalt.err (!%p1020_p11)
}
  0x28   : > { %s1451_s11 = smov 256   ;;  %183 = sbr.rel (%p1180_p8) target bundleno = 405 (0x195), region = 32 }
  0x29   : > { %900 = dma.hbm_to_vmem [thread:$0]  (!%p1216_p9), %s170_s28, 6144, %s172_s27, %s159_s4, %s1451_s11, %s1451_s11, %s1113_s30  }
  0x2a   : > { %s1239_s29 = sand.u32 (!%p1180_p8), 1, %s1101_s13  }
  0x2b   : > { %s877_s17 = smul.u32 (!%p1180_p8), 384, %s1239_s29  ;;  %s186_s25 = scalar_lea.sflag (!%p1180_p8), [#allocation3], %s1239_s29 }
  0x2d   : > { %s1245_s26 = scalar_lea.vmem [#allocation2], %s877_s17 }
  0x2e   : > { %1084 = dma.done.wait (%p1167_p4), %s186_s25, 6144  }
  0x2f   : > { %1086 = vsyncadd (%p1167_p4), %s186_s25, 4294961152 }
  0x30   : > { %1088 = dma.done.wait (%p41_p1), [#allocation6], 8224  }
  0x31   : > { %1090 = vsyncadd (%p41_p1), [#allocation6], 4294959072  ;;  %v304_v0 = vld [vmem:[#allocation5 + $0xf8] sm:$0xff]  ;;  %v302_v1 = vld [vmem:[#allocation5 + $0xe8] sm:$0xff]  ;;  %s1297_s18 = scalar_lea.vmem [#allocation8], %s877_s17  ;;  %s875_s23 = smul.u32 384, %s1158_s16 }
  0x32   : > { %v336_v2 = vld [vmem:[#allocation5 + $0x1f8] sm:$0xff]  ;;  %521 = vmatpush.msra.mxu2 %v304_v0  ;;  %v334_v3 = vld [vmem:[#allocation5 + $0x1e8] sm:$0xff]  ;;  %v303_v4 = vld [vmem:[#allocation5 + $0xf0] sm:$0xff]  ;;  %s761_s28 = sshll.u32 %s1297_s18, 4  ;;  %s748_s16 = scalar_lea.sflag [#allocation4], %s1239_s29  ;;  %s762_s28 = int_to_ptr.vmem [resolvable:$true] %s761_s28 }
  0x33   : > { %610 = vmatpush.msra.mxu3 %v336_v2  ;;  %v300_v5 = vld [vmem:[#allocation5 + $0xd8] sm:$0xff]  ;;  %343 = vmatpush.msra.mxu0 %v303_v4  ;;  %v301_v7 = vld [vmem:[#allocation5 + $0xe0] sm:$0xff]  ;;  %v298_v8 = vld [vmem:[#allocation5 + $0xc8] sm:$0xff]  ;;  %s760_s27 = scalar_lea.hbm %s1444_s3, %s875_s23  ;;  %s1059_s24 = scalar_lea.hbm %s1444_s3, 768 }
  0x34   : > { %v332_v6 = vld [vmem:[#allocation5 + $0x1d8] sm:$0xff]  ;;  %522 = vmatpush.msra.mxu2 %v302_v1  ;;  %v335_v9 = vld [vmem:[#allocation5 + $0x1f0] sm:$0xff]  ;;  %v330_v10 = vld [vmem:[#allocation5 + $0x1c8] sm:$0xff]  ;;  %s763_s4 = sshll.u32 %s760_s27, 4  ;;  %s764_s4 = int_to_ptr.hbm [resolvable:$true] %s763_s4 }
  0x35   : > { %611 = vmatpush.msra.mxu3 %v334_v3  ;;  %344 = vmatpush.msra.mxu0 %v301_v7  ;;  %v299_v11 = vld [vmem:[#allocation5 + $0xd0] sm:$0xff]  ;;  %v333_v12 = vld [vmem:[#allocation5 + $0x1e0] sm:$0xff]  ;;  %v296_v15 = vld [vmem:[#allocation5 + $0xb8] sm:$0xff]  ;;  %s1053_s5 = sshra.s32 %s764_s4, 4  ;;  %s1054_s5 = int_to_ptr.hbm [resolvable:$true] %s1053_s5 }
  0x36   : > { %432 = vmatpush.msra.mxu1 %v335_v9  ;;  %523 = vmatpush.msra.mxu2 %v300_v5  ;;  %v297_v13 = vld [vmem:[#allocation5 + $0xc0] sm:$0xff]  ;;  %v331_v14 = vld [vmem:[#allocation5 + $0x1d0] sm:$0xff]  ;;  %v328_v16 = vld [vmem:[#allocation5 + $0x1b8] sm:$0xff]  ;;  %s1055_s7 = scalar_lea.hbm %s1054_s5, 384  ;;  %p1060_p11 = scmp.lt.s32.totalorder %s1054_s5, %s1444_s3 }
  0x37   : > { %612 = vmatpush.msra.mxu3 %v332_v6  ;;  %345 = vmatpush.msra.mxu0 %v299_v11  ;;  %v295_v17 = vld [vmem:[#allocation5 + $0xb0] sm:$0xff]  ;;  %v329_v18 = vld [vmem:[#allocation5 + $0x1c0] sm:$0xff]  ;;  %v294_v19 = vld [vmem:[#allocation5 + $0xa8] sm:$0xff]  ;;  %p1056_p1 = scmp.ne.s32.totalorder %s1054_s5, %s1055_s7  ;;  %p1061_p9 = scmp.lt.s32.totalorder %s1059_s24, %s1055_s7 }
  0x38   : > { %433 = vmatpush.msra.mxu1 %v333_v12  ;;  %524 = vmatpush.msra.mxu2 %v298_v8  ;;  %v326_v20 = vld [vmem:[#allocation5 + $0x1a8] sm:$0xff]  ;;  %v293_v21 = vld [vmem:[#allocation5 + $0xa0] sm:$0xff]  ;;  %v327_v22 = vld [vmem:[#allocation5 + $0x1b0] sm:$0xff] }
  0x39   : > { %613 = vmatpush.msra.mxu3 %v330_v10  ;;  %346 = vmatpush.msra.mxu0 %v297_v13  ;;  %v292_v23 = vld [vmem:[#allocation5 + $0x98] sm:$0xff]  ;;  %v291_v25 = vld [vmem:[#allocation5 + $0x90] sm:$0xff]  ;;  %v325_v26 = vld [vmem:[#allocation5 + $0x1a0] sm:$0xff]  ;;  %p1057_p4 = pnand %p1056_p1, %p1206_p3  ;;  %p1062_p2 = por %p1061_p9, %p1060_p11 }
  0x3a   : > { %434 = vmatpush.msra.mxu1 %v331_v14  ;;  %525 = vmatpush.msra.mxu2 %v296_v15  ;;  %v324_v24 = vld [vmem:[#allocation5 + $0x198] sm:$0xff]  ;;  %v290_v27 = vld [vmem:[#allocation5 + $0x88] sm:$0xff]  ;;  %v289_v29 = vld [vmem:[#allocation5 + $0x80] sm:$0xff] }
  0x3b   : > { %614 = vmatpush.msra.mxu3 %v328_v16  ;;  %347 = vmatpush.msra.mxu0 %v295_v17  ;;  %v322_v28 = vld [vmem:[#allocation5 + $0x188] sm:$0xff]  ;;  %v323_v30 = vld [vmem:[#allocation5 + $0x190] sm:$0xff]  ;;  %v288_v31 = vld [vmem:[#allocation5 + $0x78] sm:$0xff]  ;;  %p1058_p8 = pneg %p1057_p4 }
  0x3c   : > { %435 = vmatpush.msra.mxu1 %v329_v18  ;;  %526 = vmatpush.msra.mxu2 %v294_v19  ;;  %v320_v32 = vld [vmem:[#allocation5 + $0x178] sm:$0xff]  ;;  %v287_v33 = vld [vmem:[#allocation5 + $0x70] sm:$0xff]  ;;  %v321_v34 = vld [vmem:[#allocation5 + $0x180] sm:$0xff] }
  0x3d   : > { %615 = vmatpush.msra.mxu3 %v326_v20  ;;  %348 = vmatpush.msra.mxu0 %v293_v21  ;;  %v286_v35 = vld [vmem:[#allocation5 + $0x68] sm:$0xff]  ;;  %v285_v37 = vld [vmem:[#allocation5 + $0x60] sm:$0xff]  ;;  %v319_v38 = vld [vmem:[#allocation5 + $0x170] sm:$0xff]  ;;  %p1063_p10 = pnand %p1062_p2, %p1058_p8 }
  0x3e   : > { %436 = vmatpush.msra.mxu1 %v327_v22  ;;  %527 = vmatpush.msra.mxu2 %v292_v23  ;;  %v318_v36 = vld [vmem:[#allocation5 + $0x168] sm:$0xff]  ;;  %v284_v39 = vld [vmem:[#allocation5 + $0x58] sm:$0xff]  ;;  %v283_v41 = vld [vmem:[#allocation5 + $0x50] sm:$0xff] }
  0x3f   : > { %616 = vmatpush.msra.mxu3 %v324_v24  ;;  %349 = vmatpush.msra.mxu0 %v291_v25  ;;  %v316_v40 = vld [vmem:[#allocation5 + $0x158] sm:$0xff]  ;;  %v317_v42 = vld [vmem:[#allocation5 + $0x160] sm:$0xff]  ;;  %v282_v43 = vld [vmem:[#allocation5 + $0x48] sm:$0xff] }
  0x40   : > { %437 = vmatpush.msra.mxu1 %v325_v26  ;;  %528 = vmatpush.msra.mxu2 %v290_v27  ;;  %v314_v44 = vld [vmem:[#allocation5 + $0x148] sm:$0xff]  ;;  %v281_v45 = vld [vmem:[#allocation5 + $0x40] sm:$0xff]  ;;  %v315_v46 = vld [vmem:[#allocation5 + $0x150] sm:$0xff] }
  0x41   : > { %617 = vmatpush.msra.mxu3 %v322_v28  ;;  %350 = vmatpush.msra.mxu0 %v289_v29  ;;  %v280_v47 = vld [vmem:[#allocation5 + $0x38] sm:$0xff]  ;;  %v279_v49 = vld [vmem:[#allocation5 + $0x30] sm:$0xff]  ;;  %v313_v50 = vld [vmem:[#allocation5 + $0x140] sm:$0xff] }
  0x42   : > { %438 = vmatpush.msra.mxu1 %v323_v30  ;;  %529 = vmatpush.msra.mxu2 %v288_v31  ;;  %v312_v48 = vld [vmem:[#allocation5 + $0x138] sm:$0xff]  ;;  %v278_v51 = vld [vmem:[#allocation5 + $0x28] sm:$0xff]  ;;  %v277_v53 = vld [vmem:[#allocation5 + $0x20] sm:$0xff] }
  0x43   : > { %618 = vmatpush.msra.mxu3 %v320_v32  ;;  %351 = vmatpush.msra.mxu0 %v287_v33  ;;  %v310_v52 = vld [vmem:[#allocation5 + $0x128] sm:$0xff]  ;;  %v311_v54 = vld [vmem:[#allocation5 + $0x130] sm:$0xff]  ;;  %v276_v55 = vld [vmem:[#allocation5 + $0x18] sm:$0xff] }
  0x44   : > { %439 = vmatpush.msra.mxu1 %v321_v34  ;;  %530 = vmatpush.msra.mxu2 %v286_v35  ;;  %v308_v56 = vld [vmem:[#allocation5 + $0x118] sm:$0xff]  ;;  %v275_v57 = vld [vmem:[#allocation5 + $0x10] sm:$0xff]  ;;  %v309_v58 = vld [vmem:[#allocation5 + $0x120] sm:$0xff] }
  0x45   : > { %619 = vmatpush.msra.mxu3 %v318_v36  ;;  %352 = vmatpush.msra.mxu0 %v285_v37  ;;  %v274_v59 = vld [vmem:[#allocation5 + $0x8] sm:$0xff]  ;;  %v225_v61 = vld [vmem:[%s1245_s26] sm:$0xff]  ;;  %v307_v0 = vld [vmem:[#allocation5 + $0x110] sm:$0xff] }
  0x46   : > { %440 = vmatpush.msra.mxu1 %v319_v38  ;;  %531 = vmatpush.msra.mxu2 %v284_v39  ;;  %v306_v60 = vld [vmem:[#allocation5 + $0x108] sm:$0xff]  ;;  %v273_v63 = vld [vmem:[#allocation5] sm:$0xff]  ;;  %v227_v2 = vld [vmem:[%s1245_s26 + $0x10] sm:$0xff] }
  0x47   : > { %620 = vmatpush.msra.mxu3 %v316_v40  ;;  %353 = vmatpush.msra.mxu0 %v283_v41  ;;  %v226_v62 = vld [vmem:[%s1245_s26 + $0x8] sm:$0xff]  ;;  %v305_v1 = vld [vmem:[#allocation5 + $0x100] sm:$0xff]  ;;  %v228_v3 = vld [vmem:[%s1245_s26 + $0x18] sm:$0xff] }
  0x48   : > { %441 = vmatpush.msra.mxu1 %v317_v42  ;;  %532 = vmatpush.msra.mxu2 %v282_v43  ;;  %v229_v4 = vld [vmem:[%s1245_s26 + $0x20] sm:$0xff]  ;;  %v230_v5 = vld [vmem:[%s1245_s26 + $0x28] sm:$0xff]  ;;  %v231_v6 = vld [vmem:[%s1245_s26 + $0x30] sm:$0xff] }
  0x49   : > { %621 = vmatpush.msra.mxu3 %v314_v44  ;;  %354 = vmatpush.msra.mxu0 %v281_v45  ;;  %v232_v7 = vld [vmem:[%s1245_s26 + $0x38] sm:$0xff]  ;;  %v233_v8 = vld [vmem:[%s1245_s26 + $0x40] sm:$0xff]  ;;  %v234_v9 = vld [vmem:[%s1245_s26 + $0x48] sm:$0xff] }
  0x4a   : > { %442 = vmatpush.msra.mxu1 %v315_v46  ;;  %533 = vmatpush.msra.mxu2 %v280_v47  ;;  %v235_v10 = vld [vmem:[%s1245_s26 + $0x50] sm:$0xff]  ;;  %v236_v11 = vld [vmem:[%s1245_s26 + $0x58] sm:$0xff]  ;;  %v237_v12 = vld [vmem:[%s1245_s26 + $0x60] sm:$0xff] }
  0x4b   : > { %622 = vmatpush.msra.mxu3 %v312_v48  ;;  %355 = vmatpush.msra.mxu0 %v279_v49  ;;  %v238_v13 = vld [vmem:[%s1245_s26 + $0x68] sm:$0xff]  ;;  %v239_v14 = vld [vmem:[%s1245_s26 + $0x70] sm:$0xff]  ;;  %v240_v15 = vld [vmem:[%s1245_s26 + $0x78] sm:$0xff] }
  0x4c   : > { %443 = vmatpush.msra.mxu1 %v313_v50  ;;  %534 = vmatpush.msra.mxu2 %v278_v51  ;;  %v241_v16 = vld [vmem:[%s1245_s26 + $0x80] sm:$0xff]  ;;  %v242_v17 = vld [vmem:[%s1245_s26 + $0x88] sm:$0xff]  ;;  %v243_v18 = vld [vmem:[%s1245_s26 + $0x90] sm:$0xff] }
  0x4d   : > { %623 = vmatpush.msra.mxu3 %v310_v52  ;;  %356 = vmatpush.msra.mxu0 %v277_v53  ;;  %v244_v19 = vld [vmem:[%s1245_s26 + $0x98] sm:$0xff]  ;;  %v245_v20 = vld [vmem:[%s1245_s26 + $0xa0] sm:$0xff]  ;;  %v246_v21 = vld [vmem:[%s1245_s26 + $0xa8] sm:$0xff] }
  0x4e   : > { %444 = vmatpush.msra.mxu1 %v311_v54  ;;  %535 = vmatpush.msra.mxu2 %v276_v55  ;;  %v247_v22 = vld [vmem:[%s1245_s26 + $0xb0] sm:$0xff]  ;;  %v248_v23 = vld [vmem:[%s1245_s26 + $0xb8] sm:$0xff]  ;;  %v249_v24 = vld [vmem:[%s1245_s26 + $0xc0] sm:$0xff] }
  0x4f   : > { %624 = vmatpush.msra.mxu3 %v308_v56  ;;  %357 = vmatpush.msra.mxu0 %v275_v57  ;;  %v250_v25 = vld [vmem:[%s1245_s26 + $0xc8] sm:$0xff]  ;;  %v251_v26 = vld [vmem:[%s1245_s26 + $0xd0] sm:$0xff]  ;;  %v252_v27 = vld [vmem:[%s1245_s26 + $0xd8] sm:$0xff] }
  0x50   : > { %445 = vmatpush.msra.mxu1 %v309_v58  ;;  %536 = vmatpush.msra.mxu2 %v274_v59  ;;  %v253_v28 = vld [vmem:[%s1245_s26 + $0xe0] sm:$0xff]  ;;  %v254_v29 = vld [vmem:[%s1245_s26 + $0xe8] sm:$0xff]  ;;  %v255_v30 = vld [vmem:[%s1245_s26 + $0xf0] sm:$0xff] }
  0x51   : > { %625 = vmatpush.msra.mxu3 %v306_v60  ;;  %537 = vmatmul.f32.vlgmr.msra.gmra.mxu2 %v225_v61  ;;  %v256_v31 = vld [vmem:[%s1245_s26 + $0xf8] sm:$0xff]  ;;  %v337_v32 = vld [vmem:[#allocation7] sm:$0x3]  ;;  %v258_v35 = vld [vmem:[%s1245_s26 + $0x108] sm:$0xff] }
  0x52   : > { %626 = vmatmul.f32.vlgmr.msra.gmra.mxu3 %v226_v62  ;;  %358 = vmatpush.msra.mxu0 %v273_v63  ;;  %v1287_v33 = vperm.slane %v337_v32, 0  ;;  %v257_v34 = vld [vmem:[%s1245_s26 + $0x100] sm:$0xff]  ;;  %v1292_v38 = vperm.slane %v337_v32, 1  ;;  %v259_v44 = vld [vmem:[%s1245_s26 + $0x110] sm:$0xff]  ;;  %v260_v45 = vld [vmem:[%s1245_s26 + $0x118] sm:$0xff] }
  0x53   : > { %446 = vmatpush.msra.mxu1 %v307_v0  ;;  %359 = vmatmul.f32.vlgmr.msra.gmra.mxu0 %v225_v61  ;;  %v261_v54 = vld [vmem:[%s1245_s26 + $0x120] sm:$0xff]  ;;  %v262_v55 = vld [vmem:[%s1245_s26 + $0x128] sm:$0xff]  ;;  %v263_v0 = vld [vmem:[%s1245_s26 + $0x130] sm:$0xff] }
  0x55   : > { %447 = vmatpush.msra.mxu1 %v305_v1  ;;  %v264_v1 = vld [vmem:[%s1245_s26 + $0x138] sm:$0xff] }
  0x56   : > { %448 = vmatmul.f32.vlgmr.msra.gmra.mxu1 %v226_v62 }
  0x59   : > { %540 = vmatmul.f32.gmra.mxu2 %v227_v2 }
  0x5a   : > { %629 = vmatmul.f32.gmra.mxu3 %v228_v3 }
  0x5b   : > { %362 = vmatmul.f32.gmra.mxu0 %v227_v2 }
  0x5e   : > { %451 = vmatmul.f32.gmra.mxu1 %v228_v3 }
  0x61   : > { %543 = vmatmul.f32.gmra.mxu2 %v229_v4 }
  0x62   : > { %632 = vmatmul.f32.gmra.mxu3 %v230_v5 }
  0x63   : > { %365 = vmatmul.f32.gmra.mxu0 %v229_v4 }
  0x66   : > { %454 = vmatmul.f32.gmra.mxu1 %v230_v5 }
  0x69   : > { %546 = vmatmul.f32.gmra.mxu2 %v231_v6 }
  0x6a   : > { %635 = vmatmul.f32.gmra.mxu3 %v232_v7 }
  0x6b   : > { %368 = vmatmul.f32.gmra.mxu0 %v231_v6 }
  0x6e   : > { %457 = vmatmul.f32.gmra.mxu1 %v232_v7 }
  0x71   : > { %549 = vmatmul.f32.gmra.mxu2 %v233_v8 }
  0x72   : > { %638 = vmatmul.f32.gmra.mxu3 %v234_v9 }
  0x73   : > { %371 = vmatmul.f32.gmra.mxu0 %v233_v8 }
  0x76   : > { %460 = vmatmul.f32.gmra.mxu1 %v234_v9 }
  0x79   : > { %552 = vmatmul.f32.gmra.mxu2 %v235_v10 }
  0x7a   : > { %641 = vmatmul.f32.gmra.mxu3 %v236_v11 }
  0x7b   : > { %374 = vmatmul.f32.gmra.mxu0 %v235_v10  ;;  %v265_v10 = vld [vmem:[%s1245_s26 + $0x140] sm:$0xff] }
  0x7e   : > { %463 = vmatmul.f32.gmra.mxu1 %v236_v11  ;;  %v266_v11 = vld [vmem:[%s1245_s26 + $0x148] sm:$0xff] }
  0x81   : > { %555 = vmatmul.f32.gmra.mxu2 %v237_v12 }
  0x82   : > { %644 = vmatmul.f32.gmra.mxu3 %v238_v13 }
  0x83   : > { %377 = vmatmul.f32.gmra.mxu0 %v237_v12 }
  0x86   : > { %466 = vmatmul.f32.gmra.mxu1 %v238_v13 }
  0x89   : > { %558 = vmatmul.f32.gmra.mxu2 %v239_v14 }
  0x8a   : > { %647 = vmatmul.f32.gmra.mxu3 %v240_v15 }
  0x8b   : > { %380 = vmatmul.f32.gmra.mxu0 %v239_v14 }
  0x8e   : > { %469 = vmatmul.f32.gmra.mxu1 %v240_v15 }
  0x91   : > { %561 = vmatmul.f32.gmra.mxu2 %v241_v16 }
  0x92   : > { %650 = vmatmul.f32.gmra.mxu3 %v242_v17 }
  0x93   : > { %383 = vmatmul.f32.gmra.mxu0 %v241_v16 }
  0x96   : > { %472 = vmatmul.f32.gmra.mxu1 %v242_v17 }
  0x99   : > { %564 = vmatmul.f32.gmra.mxu2 %v243_v18 }
  0x9a   : > { %653 = vmatmul.f32.gmra.mxu3 %v244_v19 }
  0x9b   : > { %386 = vmatmul.f32.gmra.mxu0 %v243_v18 }
  0x9e   : > { %475 = vmatmul.f32.gmra.mxu1 %v244_v19 }
  0xa1   : > { %567 = vmatmul.f32.gmra.mxu2 %v245_v20 }
  0xa2   : > { %656 = vmatmul.f32.gmra.mxu3 %v246_v21 }
  0xa3   : > { %389 = vmatmul.f32.gmra.mxu0 %v245_v20  ;;  %v267_v20 = vld [vmem:[%s1245_s26 + $0x150] sm:$0xff] }
  0xa6   : > { %478 = vmatmul.f32.gmra.mxu1 %v246_v21  ;;  %v268_v21 = vld [vmem:[%s1245_s26 + $0x158] sm:$0xff] }
  0xa9   : > { %570 = vmatmul.f32.gmra.mxu2 %v247_v22 }
  0xaa   : > { %659 = vmatmul.f32.gmra.mxu3 %v248_v23 }
  0xab   : > { %392 = vmatmul.f32.gmra.mxu0 %v247_v22 }
  0xae   : > { %481 = vmatmul.f32.gmra.mxu1 %v248_v23 }
  0xb1   : > { %573 = vmatmul.f32.gmra.mxu2 %v249_v24 }
  0xb2   : > { %662 = vmatmul.f32.gmra.mxu3 %v250_v25 }
  0xb3   : > { %395 = vmatmul.f32.gmra.mxu0 %v249_v24 }
  0xb6   : > { %484 = vmatmul.f32.gmra.mxu1 %v250_v25 }
  0xb9   : > { %576 = vmatmul.f32.gmra.mxu2 %v251_v26 }
  0xba   : > { %665 = vmatmul.f32.gmra.mxu3 %v252_v27 }
  0xbb   : > { %398 = vmatmul.f32.gmra.mxu0 %v251_v26 }
  0xbe   : > { %487 = vmatmul.f32.gmra.mxu1 %v252_v27 }
  0xc1   : > { %579 = vmatmul.f32.gmra.mxu2 %v253_v28 }
  0xc2   : > { %668 = vmatmul.f32.gmra.mxu3 %v254_v29 }
  0xc3   : > { %401 = vmatmul.f32.gmra.mxu0 %v253_v28 }
  0xc6   : > { %490 = vmatmul.f32.gmra.mxu1 %v254_v29 }
  0xc9   : > { %582 = vmatmul.f32.gmra.mxu2 %v255_v30 }
  0xca   : > { %671 = vmatmul.f32.gmra.mxu3 %v256_v31 }
  0xcb   : > { %404 = vmatmul.f32.gmra.mxu0 %v255_v30  ;;  %v269_v30 = vld [vmem:[%s1245_s26 + $0x160] sm:$0xff] }
  0xce   : > { %493 = vmatmul.f32.gmra.mxu1 %v256_v31  ;;  %v270_v31 = vld [vmem:[%s1245_s26 + $0x168] sm:$0xff] }
  0xd0   : > { %v360_v36 = vpop.f32.mrf.mxu0 }
  0xd1   : > { %585 = vmatmul.f32.gmra.mxu2 %v257_v34  ;;  %v361_v37 = vadd.f32 %v360_v36, %v1287_v33 }
  0xd2   : > { %674 = vmatmul.f32.gmra.mxu3 %v258_v35 }
  0xd3   : > { %v449_v39 = vpop.f32.mrf.mxu1  ;;  %407 = vmatmul.f32.gmra.mxu0 %v257_v34 }
  0xd4   : > { %v450_v40 = vadd.f32 %v449_v39, %v361_v37  ;;  %v538_v41 = vpop.f32.mrf.mxu2 }
  0xd5   : > { %v627_v42 = vpop.f32.mrf.mxu3  ;;  %v539_v43 = vadd.f32 %v538_v41, %v1292_v38 }
  0xd6   : > { %699 = vst [vmem:[%s1297_s18] sm:$0xff] %v450_v40  ;;  %496 = vmatmul.f32.gmra.mxu1 %v258_v35 }
  0xd7   : > { %v628_v46 = vadd.f32 %v627_v42, %v539_v43  ;;  %v271_v42 = vld [vmem:[%s1245_s26 + $0x170] sm:$0xff]  ;;  %v272_v43 = vld [vmem:[%s1245_s26 + $0x178] sm:$0xff] }
  0xd8   : > { %v363_v47 = vpop.f32.mrf.mxu0 }
  0xd9   : > { %700 = vst [vmem:[%s1297_s18 + $0x8] sm:$0xff] %v628_v46  ;;  %588 = vmatmul.f32.gmra.mxu2 %v259_v44  ;;  %v364_v48 = vadd.f32 %v363_v47, %v1287_v33 }
  0xda   : > { %677 = vmatmul.f32.gmra.mxu3 %v260_v45 }
  0xdb   : > { %v452_v49 = vpop.f32.mrf.mxu1  ;;  %410 = vmatmul.f32.gmra.mxu0 %v259_v44 }
  0xdc   : > { %v453_v50 = vadd.f32 %v452_v49, %v364_v48  ;;  %v541_v51 = vpop.f32.mrf.mxu2 }
  0xdd   : > { %v630_v52 = vpop.f32.mrf.mxu3  ;;  %v542_v53 = vadd.f32 %v541_v51, %v1292_v38 }
  0xde   : > { %701 = vst [vmem:[%s1297_s18 + $0x10] sm:$0xff] %v453_v50  ;;  %499 = vmatmul.f32.gmra.mxu1 %v260_v45 }
  0xdf   : > { %v631_v56 = vadd.f32 %v630_v52, %v542_v53 }
  0xe0   : > { %v366_v57 = vpop.f32.mrf.mxu0 }
  0xe1   : > { %702 = vst [vmem:[%s1297_s18 + $0x18] sm:$0xff] %v631_v56  ;;  %591 = vmatmul.f32.gmra.mxu2 %v261_v54  ;;  %v367_v58 = vadd.f32 %v366_v57, %v1287_v33 }
  0xe2   : > { %680 = vmatmul.f32.gmra.mxu3 %v262_v55 }
  0xe3   : > { %v455_v59 = vpop.f32.mrf.mxu1  ;;  %413 = vmatmul.f32.gmra.mxu0 %v261_v54 }
  0xe4   : > { %v456_v60 = vadd.f32 %v455_v59, %v367_v58  ;;  %v544_v61 = vpop.f32.mrf.mxu2 }
  0xe5   : > { %v633_v62 = vpop.f32.mrf.mxu3  ;;  %v545_v63 = vadd.f32 %v544_v61, %v1292_v38 }
  0xe6   : > { %703 = vst [vmem:[%s1297_s18 + $0x20] sm:$0xff] %v456_v60  ;;  %502 = vmatmul.f32.gmra.mxu1 %v262_v55 }
  0xe7   : > { %v634_v2 = vadd.f32 %v633_v62, %v545_v63 }
  0xe8   : > { %v369_v3 = vpop.f32.mrf.mxu0 }
  0xe9   : > { %704 = vst [vmem:[%s1297_s18 + $0x28] sm:$0xff] %v634_v2  ;;  %594 = vmatmul.f32.gmra.mxu2 %v263_v0  ;;  %v370_v4 = vadd.f32 %v369_v3, %v1287_v33 }
  0xea   : > { %683 = vmatmul.f32.gmra.mxu3 %v264_v1 }
  0xeb   : > { %v458_v5 = vpop.f32.mrf.mxu1  ;;  %416 = vmatmul.f32.gmra.mxu0 %v263_v0 }
  0xec   : > { %v459_v6 = vadd.f32 %v458_v5, %v370_v4  ;;  %v547_v7 = vpop.f32.mrf.mxu2 }
  0xed   : > { %v636_v8 = vpop.f32.mrf.mxu3  ;;  %v548_v9 = vadd.f32 %v547_v7, %v1292_v38 }
  0xee   : > { %705 = vst [vmem:[%s1297_s18 + $0x30] sm:$0xff] %v459_v6  ;;  %505 = vmatmul.f32.gmra.mxu1 %v264_v1 }
  0xef   : > { %v637_v12 = vadd.f32 %v636_v8, %v548_v9 }
  0xf0   : > { %v372_v13 = vpop.f32.mrf.mxu0 }
  0xf1   : > { %706 = vst [vmem:[%s1297_s18 + $0x38] sm:$0xff] %v637_v12  ;;  %597 = vmatmul.f32.gmra.mxu2 %v265_v10  ;;  %v373_v14 = vadd.f32 %v372_v13, %v1287_v33 }
  0xf2   : > { %686 = vmatmul.f32.gmra.mxu3 %v266_v11 }
  0xf3   : > { %v461_v15 = vpop.f32.mrf.mxu1  ;;  %419 = vmatmul.f32.gmra.mxu0 %v265_v10 }
  0xf4   : > { %v462_v16 = vadd.f32 %v461_v15, %v373_v14  ;;  %v550_v17 = vpop.f32.mrf.mxu2 }
  0xf5   : > { %v639_v18 = vpop.f32.mrf.mxu3  ;;  %v551_v19 = vadd.f32 %v550_v17, %v1292_v38 }
  0xf6   : > { %707 = vst [vmem:[%s1297_s18 + $0x40] sm:$0xff] %v462_v16  ;;  %508 = vmatmul.f32.gmra.mxu1 %v266_v11 }
  0xf7   : > { %v640_v22 = vadd.f32 %v639_v18, %v551_v19 }
  0xf8   : > { %v375_v23 = vpop.f32.mrf.mxu0 }
  0xf9   : > { %708 = vst [vmem:[%s1297_s18 + $0x48] sm:$0xff] %v640_v22  ;;  %600 = vmatmul.f32.gmra.mxu2 %v267_v20  ;;  %v376_v24 = vadd.f32 %v375_v23, %v1287_v33 }
  0xfa   : > { %689 = vmatmul.f32.gmra.mxu3 %v268_v21 }
  0xfb   : > { %v464_v25 = vpop.f32.mrf.mxu1  ;;  %422 = vmatmul.f32.gmra.mxu0 %v267_v20 }
  0xfc   : > { %v465_v26 = vadd.f32 %v464_v25, %v376_v24  ;;  %v553_v27 = vpop.f32.mrf.mxu2 }
  0xfd   : > { %v642_v28 = vpop.f32.mrf.mxu3  ;;  %v554_v29 = vadd.f32 %v553_v27, %v1292_v38 }
  0xfe   : > { %709 = vst [vmem:[%s1297_s18 + $0x50] sm:$0xff] %v465_v26  ;;  %511 = vmatmul.f32.gmra.mxu1 %v268_v21 }
  0xff   : > { %v643_v32 = vadd.f32 %v642_v28, %v554_v29 }
 0x100   : > { %v378_v34 = vpop.f32.mrf.mxu0 }
 0x101   : > { %710 = vst [vmem:[%s1297_s18 + $0x58] sm:$0xff] %v643_v32  ;;  %603 = vmatmul.f32.gmra.mxu2 %v269_v30  ;;  %v379_v35 = vadd.f32 %v378_v34, %v1287_v33 }
 0x102   : > { %692 = vmatmul.f32.gmra.mxu3 %v270_v31 }
 0x103   : > { %v467_v36 = vpop.f32.mrf.mxu1  ;;  %425 = vmatmul.f32.gmra.mxu0 %v269_v30 }
 0x104   : > { %v468_v37 = vadd.f32 %v467_v36, %v379_v35  ;;  %v556_v39 = vpop.f32.mrf.mxu2 }
 0x105   : > { %v645_v40 = vpop.f32.mrf.mxu3  ;;  %v557_v41 = vadd.f32 %v556_v39, %v1292_v38 }
 0x106   : > { %711 = vst [vmem:[%s1297_s18 + $0x60] sm:$0xff] %v468_v37  ;;  %514 = vmatmul.f32.gmra.mxu1 %v270_v31 }
 0x107   : > { %v646_v44 = vadd.f32 %v645_v40, %v557_v41 }
 0x108   : > { %v381_v45 = vpop.f32.mrf.mxu0 }
 0x109   : > { %712 = vst [vmem:[%s1297_s18 + $0x68] sm:$0xff] %v646_v44  ;;  %606 = vmatmul.f32.gmra.mxu2 %v271_v42  ;;  %v382_v46 = vadd.f32 %v381_v45, %v1287_v33 }
 0x10a   : > { %695 = vmatmul.f32.gmra.mxu3 %v272_v43 }
 0x10b   : > { %v470_v47 = vpop.f32.mrf.mxu1  ;;  %428 = vmatmul.f32.gmra.mxu0 %v271_v42 }
 0x10c   : > { %v471_v48 = vadd.f32 %v470_v47, %v382_v46  ;;  %v559_v49 = vpop.f32.mrf.mxu2 }
 0x10d   : > { %v648_v50 = vpop.f32.mrf.mxu3  ;;  %v560_v51 = vadd.f32 %v559_v49, %v1292_v38 }
 0x10e   : > { %713 = vst [vmem:[%s1297_s18 + $0x70] sm:$0xff] %v471_v48  ;;  %517 = vmatmul.f32.gmra.mxu1 %v272_v43 }
 0x10f   : > { %v649_v52 = vadd.f32 %v648_v50, %v560_v51 }
 0x110   : > { %v384_v53 = vpop.f32.mrf.mxu0 }
 0x111   : > { %714 = vst [vmem:[%s1297_s18 + $0x78] sm:$0xff] %v649_v52  ;;  %v385_v54 = vadd.f32 %v384_v53, %v1287_v33 }
 0x113   : > { %v473_v55 = vpop.f32.mrf.mxu1 }
 0x114   : > { %v474_v56 = vadd.f32 %v473_v55, %v385_v54  ;;  %v562_v57 = vpop.f32.mrf.mxu2 }
 0x115   : > { %v651_v58 = vpop.f32.mrf.mxu3  ;;  %v563_v59 = vadd.f32 %v562_v57, %v1292_v38 }
 0x116   : > { %715 = vst [vmem:[%s1297_s18 + $0x80] sm:$0xff] %v474_v56 }
 0x117   : > { %v652_v60 = vadd.f32 %v651_v58, %v563_v59 }
 0x118   : > { %v387_v61 = vpop.f32.mrf.mxu0 }
 0x119   : > { %716 = vst [vmem:[%s1297_s18 + $0x88] sm:$0xff] %v652_v60  ;;  %v388_v62 = vadd.f32 %v387_v61, %v1287_v33 }
 0x11b   : > { %v476_v63 = vpop.f32.mrf.mxu1 }
 0x11c   : > { %v477_v0 = vadd.f32 %v476_v63, %v388_v62  ;;  %v565_v1 = vpop.f32.mrf.mxu2 }
 0x11d   : > { %v654_v2 = vpop.f32.mrf.mxu3  ;;  %v566_v3 = vadd.f32 %v565_v1, %v1292_v38 }
 0x11e   : > { %717 = vst [vmem:[%s1297_s18 + $0x90] sm:$0xff] %v477_v0 }
 0x11f   : > { %v655_v4 = vadd.f32 %v654_v2, %v566_v3 }
 0x120   : > { %v390_v5 = vpop.f32.mrf.mxu0 }
 0x121   : > { %718 = vst [vmem:[%s1297_s18 + $0x98] sm:$0xff] %v655_v4  ;;  %v391_v6 = vadd.f32 %v390_v5, %v1287_v33 }
 0x123   : > { %v479_v7 = vpop.f32.mrf.mxu1 }
 0x124   : > { %v480_v8 = vadd.f32 %v479_v7, %v391_v6  ;;  %v568_v9 = vpop.f32.mrf.mxu2 }
 0x125   : > { %v657_v10 = vpop.f32.mrf.mxu3  ;;  %v569_v11 = vadd.f32 %v568_v9, %v1292_v38 }
 0x126   : > { %719 = vst [vmem:[%s1297_s18 + $0xa0] sm:$0xff] %v480_v8 }
 0x127   : > { %v658_v12 = vadd.f32 %v657_v10, %v569_v11 }
 0x128   : > { %v393_v13 = vpop.f32.mrf.mxu0 }
 0x129   : > { %720 = vst [vmem:[%s1297_s18 + $0xa8] sm:$0xff] %v658_v12  ;;  %v394_v14 = vadd.f32 %v393_v13, %v1287_v33 }
 0x12b   : > { %v482_v15 = vpop.f32.mrf.mxu1 }
 0x12c   : > { %v483_v16 = vadd.f32 %v482_v15, %v394_v14  ;;  %v571_v17 = vpop.f32.mrf.mxu2 }
 0x12d   : > { %v660_v18 = vpop.f32.mrf.mxu3  ;;  %v572_v19 = vadd.f32 %v571_v17, %v1292_v38 }
 0x12e   : > { %721 = vst [vmem:[%s1297_s18 + $0xb0] sm:$0xff] %v483_v16 }
 0x12f   : > { %v661_v20 = vadd.f32 %v660_v18, %v572_v19 }
 0x130   : > { %v396_v21 = vpop.f32.mrf.mxu0 }
 0x131   : > { %722 = vst [vmem:[%s1297_s18 + $0xb8] sm:$0xff] %v661_v20  ;;  %v397_v22 = vadd.f32 %v396_v21, %v1287_v33 }
 0x133   : > { %v485_v23 = vpop.f32.mrf.mxu1 }
 0x134   : > { %v486_v24 = vadd.f32 %v485_v23, %v397_v22  ;;  %v574_v25 = vpop.f32.mrf.mxu2 }
 0x135   : > { %v663_v26 = vpop.f32.mrf.mxu3  ;;  %v575_v27 = vadd.f32 %v574_v25, %v1292_v38 }
 0x136   : > { %723 = vst [vmem:[%s1297_s18 + $0xc0] sm:$0xff] %v486_v24 }
 0x137   : > { %v664_v28 = vadd.f32 %v663_v26, %v575_v27 }
 0x138   : > { %v399_v29 = vpop.f32.mrf.mxu0 }
 0x139   : > { %724 = vst [vmem:[%s1297_s18 + $0xc8] sm:$0xff] %v664_v28  ;;  %v400_v30 = vadd.f32 %v399_v29, %v1287_v33 }
 0x13b   : > { %v488_v31 = vpop.f32.mrf.mxu1 }
 0x13c   : > { %v489_v32 = vadd.f32 %v488_v31, %v400_v30  ;;  %v577_v34 = vpop.f32.mrf.mxu2 }
 0x13d   : > { %v666_v35 = vpop.f32.mrf.mxu3  ;;  %v578_v36 = vadd.f32 %v577_v34, %v1292_v38 }
 0x13e   : > { %725 = vst [vmem:[%s1297_s18 + $0xd0] sm:$0xff] %v489_v32 }
 0x13f   : > { %v667_v37 = vadd.f32 %v666_v35, %v578_v36 }
 0x140   : > { %v402_v39 = vpop.f32.mrf.mxu0 }
 0x141   : > { %726 = vst [vmem:[%s1297_s18 + $0xd8] sm:$0xff] %v667_v37  ;;  %v403_v40 = vadd.f32 %v402_v39, %v1287_v33 }
 0x143   : > { %v491_v41 = vpop.f32.mrf.mxu1 }
 0x144   : > { %v492_v42 = vadd.f32 %v491_v41, %v403_v40  ;;  %v580_v43 = vpop.f32.mrf.mxu2 }
 0x145   : > { %v669_v44 = vpop.f32.mrf.mxu3  ;;  %v581_v45 = vadd.f32 %v580_v43, %v1292_v38 }
 0x146   : > { %727 = vst [vmem:[%s1297_s18 + $0xe0] sm:$0xff] %v492_v42 }
 0x147   : > { %v670_v46 = vadd.f32 %v669_v44, %v581_v45 }
 0x148   : > { %v405_v47 = vpop.f32.mrf.mxu0 }
 0x149   : > { %728 = vst [vmem:[%s1297_s18 + $0xe8] sm:$0xff] %v670_v46  ;;  %v406_v48 = vadd.f32 %v405_v47, %v1287_v33 }
 0x14b   : > { %v494_v49 = vpop.f32.mrf.mxu1 }
 0x14c   : > { %v495_v50 = vadd.f32 %v494_v49, %v406_v48  ;;  %v583_v51 = vpop.f32.mrf.mxu2 }
 0x14d   : > { %v672_v52 = vpop.f32.mrf.mxu3  ;;  %v584_v53 = vadd.f32 %v583_v51, %v1292_v38 }
 0x14e   : > { %729 = vst [vmem:[%s1297_s18 + $0xf0] sm:$0xff] %v495_v50 }
 0x14f   : > { %v673_v54 = vadd.f32 %v672_v52, %v584_v53 }
 0x150   : > { %v408_v55 = vpop.f32.mrf.mxu0 }
 0x151   : > { %730 = vst [vmem:[%s1297_s18 + $0xf8] sm:$0xff] %v673_v54  ;;  %v409_v56 = vadd.f32 %v408_v55, %v1287_v33 }
 0x153   : > { %v497_v57 = vpop.f32.mrf.mxu1 }
 0x154   : > { %v498_v58 = vadd.f32 %v497_v57, %v409_v56  ;;  %v586_v59 = vpop.f32.mrf.mxu2 }
 0x155   : > { %v675_v60 = vpop.f32.mrf.mxu3  ;;  %v587_v61 = vadd.f32 %v586_v59, %v1292_v38 }
 0x156   : > { %731 = vst [vmem:[%s1297_s18 + $0x100] sm:$0xff] %v498_v58 }
 0x157   : > { %v676_v62 = vadd.f32 %v675_v60, %v587_v61 }
 0x158   : > { %v411_v63 = vpop.f32.mrf.mxu0 }
 0x159   : > { %732 = vst [vmem:[%s1297_s18 + $0x108] sm:$0xff] %v676_v62  ;;  %v412_v0 = vadd.f32 %v411_v63, %v1287_v33 }
 0x15b   : > { %v500_v1 = vpop.f32.mrf.mxu1 }
 0x15c   : > { %v501_v2 = vadd.f32 %v500_v1, %v412_v0  ;;  %v589_v3 = vpop.f32.mrf.mxu2 }
 0x15d   : > { %v678_v4 = vpop.f32.mrf.mxu3  ;;  %v590_v5 = vadd.f32 %v589_v3, %v1292_v38 }
 0x15e   : > { %733 = vst [vmem:[%s1297_s18 + $0x110] sm:$0xff] %v501_v2 }
 0x15f   : > { %v679_v6 = vadd.f32 %v678_v4, %v590_v5 }
 0x160   : > { %v414_v7 = vpop.f32.mrf.mxu0 }
 0x161   : > { %734 = vst [vmem:[%s1297_s18 + $0x118] sm:$0xff] %v679_v6  ;;  %v415_v8 = vadd.f32 %v414_v7, %v1287_v33 }
 0x163   : > { %v503_v9 = vpop.f32.mrf.mxu1 }
 0x164   : > { %v504_v10 = vadd.f32 %v503_v9, %v415_v8  ;;  %v592_v11 = vpop.f32.mrf.mxu2 }
 0x165   : > { %v681_v12 = vpop.f32.mrf.mxu3  ;;  %v593_v13 = vadd.f32 %v592_v11, %v1292_v38 }
 0x166   : > { %735 = vst [vmem:[%s1297_s18 + $0x120] sm:$0xff] %v504_v10 }
 0x167   : > { %v682_v14 = vadd.f32 %v681_v12, %v593_v13 }
 0x168   : > { %v417_v15 = vpop.f32.mrf.mxu0 }
 0x169   : > { %736 = vst [vmem:[%s1297_s18 + $0x128] sm:$0xff] %v682_v14  ;;  %v418_v16 = vadd.f32 %v417_v15, %v1287_v33 }
 0x16b   : > { %v506_v17 = vpop.f32.mrf.mxu1 }
 0x16c   : > { %v507_v18 = vadd.f32 %v506_v17, %v418_v16  ;;  %v595_v19 = vpop.f32.mrf.mxu2 }
 0x16d   : > { %v684_v20 = vpop.f32.mrf.mxu3  ;;  %v596_v21 = vadd.f32 %v595_v19, %v1292_v38 }
 0x16e   : > { %737 = vst [vmem:[%s1297_s18 + $0x130] sm:$0xff] %v507_v18 }
 0x16f   : > { %v685_v22 = vadd.f32 %v684_v20, %v596_v21 }
 0x170   : > { %v420_v23 = vpop.f32.mrf.mxu0 }
 0x171   : > { %738 = vst [vmem:[%s1297_s18 + $0x138] sm:$0xff] %v685_v22  ;;  %v421_v24 = vadd.f32 %v420_v23, %v1287_v33 }
 0x173   : > { %v509_v25 = vpop.f32.mrf.mxu1 }
 0x174   : > { %v510_v26 = vadd.f32 %v509_v25, %v421_v24  ;;  %v598_v27 = vpop.f32.mrf.mxu2 }
 0x175   : > { %v687_v28 = vpop.f32.mrf.mxu3  ;;  %v599_v29 = vadd.f32 %v598_v27, %v1292_v38 }
 0x176   : > { %739 = vst [vmem:[%s1297_s18 + $0x140] sm:$0xff] %v510_v26 }
 0x177   : > { %v688_v30 = vadd.f32 %v687_v28, %v599_v29 }
 0x178   : > { %v423_v31 = vpop.f32.mrf.mxu0 }
 0x179   : > { %740 = vst [vmem:[%s1297_s18 + $0x148] sm:$0xff] %v688_v30  ;;  %v424_v32 = vadd.f32 %v423_v31, %v1287_v33 }
 0x17b   : > { %v512_v34 = vpop.f32.mrf.mxu1 }
 0x17c   : > { %v513_v35 = vadd.f32 %v512_v34, %v424_v32  ;;  %v601_v36 = vpop.f32.mrf.mxu2 }
 0x17d   : > { %v690_v37 = vpop.f32.mrf.mxu3  ;;  %v602_v39 = vadd.f32 %v601_v36, %v1292_v38 }
 0x17e   : > { %741 = vst [vmem:[%s1297_s18 + $0x150] sm:$0xff] %v513_v35 }
 0x17f   : > { %v691_v40 = vadd.f32 %v690_v37, %v602_v39 }
 0x180   : > { %v426_v41 = vpop.f32.mrf.mxu0 }
 0x181   : > { %742 = vst [vmem:[%s1297_s18 + $0x158] sm:$0xff] %v691_v40  ;;  %v427_v42 = vadd.f32 %v426_v41, %v1287_v33 }
 0x183   : > { %v515_v43 = vpop.f32.mrf.mxu1 }
 0x184   : > { %v516_v44 = vadd.f32 %v515_v43, %v427_v42  ;;  %v604_v45 = vpop.f32.mrf.mxu2 }
 0x185   : > { %v693_v46 = vpop.f32.mrf.mxu3  ;;  %v605_v47 = vadd.f32 %v604_v45, %v1292_v38 }
 0x186   : > { %743 = vst [vmem:[%s1297_s18 + $0x160] sm:$0xff] %v516_v44 }
 0x187   : > { %v694_v48 = vadd.f32 %v693_v46, %v605_v47 }
 0x188   : > { %v429_v49 = vpop.f32.mrf.mxu0 }
 0x189   : > { %744 = vst [vmem:[%s1297_s18 + $0x168] sm:$0xff] %v694_v48  ;;  %v430_v50 = vadd.f32 %v429_v49, %v1287_v33 }
 0x18b   : > { %v518_v51 = vpop.f32.mrf.mxu1 }
 0x18c   : > { %v519_v52 = vadd.f32 %v518_v51, %v430_v50  ;;  %v607_v53 = vpop.f32.mrf.mxu2 }
 0x18d   : > { %v696_v54 = vpop.f32.mrf.mxu3  ;;  %v608_v55 = vadd.f32 %v607_v53, %v1292_v38 }
 0x18e   : > { %745 = vst [vmem:[%s1297_s18 + $0x170] sm:$0xff] %v519_v52 }
 0x18f   : > { %v697_v56 = vadd.f32 %v696_v54, %v608_v55 }
 0x191   : > { %746 = vst [vmem:[%s1297_s18 + $0x178] sm:$0xff] %v697_v56 }
 0x192   : > { %1066 = shalt.err (!%p1063_p10)
}
 0x193   : > { %s1115_s29 = smov 256   ;;  %s1116_s17 = smov 16  }
 0x194   : > { %888 = dma.vmem_to_hbm [thread:$0]  (%p1206_p3), %s762_s28, 6144, %s764_s4, %s748_s16, %s1115_s29, %s1115_s29, %s1116_s17  }
 0x195 PF: > { %s778_s25 = sand.u32 1, %s1097_s12   ;;  %p1452_p12 = scmp.ge.s32.totalorder %s1109_s15, 2 }
 0x196   : > { %s779_s26 = scalar_lea.sflag [#allocation4], %s778_s25 }
 0x197   : > { %p902_p13 = pnand %p1452_p12, %p1172_p6 }
 0x199   : > { %p903_p0 = pneg %p902_p13 }
 0x19b   : > { %1092 = dma.done.wait (%p903_p0), %s779_s26, 6144  }
 0x19c   : > { %1094 = vsyncadd (%p903_p0), %s779_s26, 4294961152  ;;  %p17_p5 = scmp.ge.s32.totalorder %s1196_s6, 4   ;;  %s1453_s12 = smov %s1101_s13 }
 0x19d   : > { %s1454_s13 = smov %s1105_s14  ;;  %s1455_s14 = smov %s1212_s10 }
 0x19e   : > { %s1456_s15 = smov %s1196_s6  ;;  %19 = sbr.rel (!%p17_p5) target bundleno = 6 (0x6), region = 85 }
 0x1a3   :  { %785 = vsyncpa [#allocation3], 1 }
 0x1a4   :  { %787 = vsyncpa [#allocation3 + $0x1], 1 }
 0x1a5   :  { %788 = vsyncpa [#allocation6], 1 }
 0x1a6   :  { %789 = vsyncpa [#allocation4], 1 }
 0x1a7   :  { %791 = vsyncpa [#allocation4 + $0x1], 1 }

</bundles_post_ra>
